<compile_context>
chip_gen: v6e
topology: v6e:2x2x1
jax: 0.10.0
libtpu: 0.0.40
codegen_flags: <defaults>
</compile_context>

<pallas_src>
import math

import jax
import jax.numpy as jnp
from jax.experimental import pallas as pl
from jax.experimental.pallas import tpu as pltpu


LANE = 128      # lane width: hidden dims padded to a multiple of this
SUBLANE = 8     # f32 sublane width: batch tile must be a multiple of this
MAX_TB = 1024   # big tiles amortize per-step overhead on v5e/v6e; <10 MiB VMEM
MIN_TILES = 4   # v7x: >= 2 tiles per TensorCore so the pipeline double-buffers


def _round_up(x, m):
    return ((x + m - 1) // m) * m


def _cdiv(a, b):
    return (a + b - 1) // b


def actor_kernel(x_ref, w1_ref, b1_ref, w2_ref, b2_ref, w3_ref, b3_ref, out_ref):
    """Fused actor forward for one (tb, d_in) batch tile."""
    # Exact-f32 MXU accumulation to match the f32 PyTorch module.
    # TODO(synk): at large training batches on v6e/v7x, feed bf16 operands
    # (f32 accumulation) for native MXU rate if ~1e-3 error is acceptable.
    dot = lambda a, b: jnp.dot(a, b, preferred_element_type=jnp.float32,
                               precision=jax.lax.Precision.HIGHEST)

    x = x_ref[...]

    # fc1 + relu
    h1 = jnp.maximum(dot(x, w1_ref[...]) + b1_ref[...], 0.0)

    # fc2 + relu
    h2 = jnp.maximum(dot(h1, w2_ref[...]) + b2_ref[...], 0.0)

    # mu + tanh (tanh runs on EUP/VPU, off the MXU critical path)
    mu = dot(h2, w3_ref[...]) + b3_ref[...]
    out_ref[...] = jnp.tanh(mu).astype(out_ref.dtype)


def prepare_params(w1, b1, w2, b2, w3, b3):
    """Zero-pad only the hidden dims (fc1/fc2 outputs) to a multiple of 128 lanes.
    The HBM-facing dims (input features, n_actions) stay unpadded. Done once at
    init time, not per forward call. Zero padding is exact through relu/matmul."""
    h1, h2 = w1.shape[1], w2.shape[1]
    h1_p, h2_p = _round_up(h1, LANE), _round_up(h2, LANE)

    w1p = jnp.pad(w1, ((0, 0), (0, h1_p - h1)))                          # (d_in, h1_p)
    b1p = jnp.pad(b1.reshape(1, -1), ((0, 0), (0, h1_p - h1)))           # (1, h1_p)
    w2p = jnp.pad(w2, ((0, h1_p - w2.shape[0]), (0, h2_p - h2)))         # (h1_p, h2_p)
    b2p = jnp.pad(b2.reshape(1, -1), ((0, 0), (0, h2_p - h2)))           # (1, h2_p)
    w3p = jnp.pad(w3, ((0, h2_p - w3.shape[0]), (0, 0)))                 # (h2_p, n_act)
    b3p = b3.reshape(1, -1)                                              # (1, n_act)
    return w1p, b1p, w2p, b2p, w3p, b3p


@jax.jit
def actor_forward(state, w1p, b1p, w2p, b2p, w3p, b3p):
    """state: (B, input_dim) f32, unpadded; params already padded via prepare_params."""
    B, d_in = state.shape
    h1_p = w1p.shape[1]
    h2_p = w2p.shape[1]
    n_actions = w3p.shape[1]

    # Batch tile: multiple of 8 sublanes; guarantee >= MIN_TILES grid steps
    # (>= 2 per TC on v7x) before capping at MAX_TB.
    tb = max(SUBLANE, min(MAX_TB, _round_up(_cdiv(B, MIN_TILES), SUBLANE)))
    grid = (_cdiv(B, tb),)  # partial last block is masked; rows are independent

    resident = lambda i: (0, 0)  # weights/biases: same block every step -> stay in VMEM

    return pl.pallas_call(
        actor_kernel,
        out_shape=jax.ShapeDtypeStruct((B, n_actions), jnp.float32),
        grid=grid,
        in_specs=[
            pl.BlockSpec((tb, d_in), lambda i: (i, 0)),   # state tile, unpadded lanes
            pl.BlockSpec((d_in, h1_p), resident),         # W1
            pl.BlockSpec((1, h1_p), resident),            # b1
            pl.BlockSpec((h1_p, h2_p), resident),         # W2
            pl.BlockSpec((1, h2_p), resident),            # b2
            pl.BlockSpec((h2_p, n_actions), resident),    # W3
            pl.BlockSpec((1, n_actions), resident),       # b3
        ],
        out_specs=pl.BlockSpec((tb, n_actions), lambda i: (i, 0)),  # unpadded actions
        compiler_params=pltpu.CompilerParams(
            dimension_semantics=("parallel",),   # v7x: shard batch tiles over 2 TCs
        ),
    )(state.astype(jnp.float32), w1p, b1p, w2p, b2p, w3p, b3p)


def init_linear_params(key, fan_in, fan_out):
    """Mimic PyTorch nn.Linear default init U(-1/sqrt(fan_in), +1/sqrt(fan_in)).
    Stored as (in, out) — transposed relative to PyTorch's (out, in) layout."""
    k_w, k_b = jax.random.split(key)
    bound = 1.0 / math.sqrt(fan_in)
    w = jax.random.uniform(k_w, (fan_in, fan_out), jnp.float32, -bound, bound)
    b = jax.random.uniform(k_b, (1, fan_out), jnp.float32, -bound, bound)
    return w, b


def _reference(state, w1, b1, w2, b2, w3, b3):
    dot = lambda a, b: jnp.dot(a, b, precision=jax.lax.Precision.HIGHEST)
    h = jnp.maximum(dot(state, w1) + b1, 0.0)
    h = jnp.maximum(dot(h, w2) + b2, 0.0)
    return jnp.tanh(dot(h, w3) + b3)


if __name__ == "__main__":
    # Shapes consistent with the module: input_dims=(8,), fc1=32, fc2=32, n_actions=4.
    input_dim, fc1_dims, fc2_dims, n_actions = 8, 32, 32, 4

    key = jax.random.PRNGKey(0)
    k_x, k_x2, k1, k2, k3 = jax.random.split(key, 5)

    w1, b1 = init_linear_params(k1, input_dim, fc1_dims)
    w2, b2 = init_linear_params(k2, fc1_dims, fc2_dims)
    w3, b3 = init_linear_params(k3, fc2_dims, n_actions)
    padded = prepare_params(w1, b1, w2, b2, w3, b3)

    # Small inference batch (matches the spec's tiny shapes; single partial tile).
    state_small = jax.random.normal(k_x, (2, input_dim), jnp.float32)
    out_small = jax.block_until_ready(actor_forward(state_small, *padded))
    ref_small = _reference(state_small, w1, b1, w2, b2, w3, b3)
    assert out_small.shape == (2, n_actions)
    assert jnp.allclose(out_small, ref_small, atol=1e-5, rtol=1e-5)

    # Larger training-style batch: non-multiple of the tile, exercises the
    # batch grid, resident weights, and the masked partial last block.
    state_big = jax.random.normal(k_x2, (1000, input_dim), jnp.float32)
    out_big = jax.block_until_ready(actor_forward(state_big, *padded))
    ref_big = _reference(state_big, w1, b1, w2, b2, w3, b3)
    assert out_big.shape == (1000, n_actions)
    assert jnp.allclose(out_big, ref_big, atol=1e-5, rtol=1e-5)

    print("KERNEL_OK")
</pallas_src>

<mosaic_0001>
module attributes {stable_mosaic.version = 11 : i64} {
  func.func @actor_kernel(%arg0: i32, %arg1: memref<8x8xf32, #tpu.memory_space<vmem>>, %arg2: memref<8x128xf32, #tpu.memory_space<vmem>>, %arg3: memref<1x128xf32, #tpu.memory_space<vmem>>, %arg4: memref<128x128xf32, #tpu.memory_space<vmem>>, %arg5: memref<1x128xf32, #tpu.memory_space<vmem>>, %arg6: memref<128x4xf32, #tpu.memory_space<vmem>>, %arg7: memref<1x4xf32, #tpu.memory_space<vmem>>, %arg8: memref<8x4xf32, #tpu.memory_space<vmem>>) attributes {dimension_semantics = [#tpu.dimension_semantics<parallel>], iteration_bounds = array<i64: 1>, scalar_prefetch = 0 : i64, scratch_operands = 0 : i64, tpu.core_type = #tpu.core_type<tc>, window_params = [{transform_indices = @transform_0, window_bounds = array<i64: 8, 8>}, {pipeline_mode = #tpu.pipeline_mode<synchronous>, transform_indices = @transform_1, window_bounds = array<i64: 8, 128>}, {pipeline_mode = #tpu.pipeline_mode<synchronous>, transform_indices = @transform_2, window_bounds = array<i64: 1, 128>}, {pipeline_mode = #tpu.pipeline_mode<synchronous>, transform_indices = @transform_3, window_bounds = array<i64: 128, 128>}, {pipeline_mode = #tpu.pipeline_mode<synchronous>, transform_indices = @transform_4, window_bounds = array<i64: 1, 128>}, {pipeline_mode = #tpu.pipeline_mode<synchronous>, transform_indices = @transform_5, window_bounds = array<i64: 128, 4>}, {pipeline_mode = #tpu.pipeline_mode<synchronous>, transform_indices = @transform_6, window_bounds = array<i64: 1, 4>}, {transform_indices = @transform_7, window_bounds = array<i64: 8, 4>}]} {
    %c0 = arith.constant 0 : index
    %c0_0 = arith.constant 0 : index
    %0 = vector.load %arg1[%c0, %c0_0] : memref<8x8xf32, #tpu.memory_space<vmem>>, vector<8x8xf32>
    %c0_1 = arith.constant 0 : index
    %c0_2 = arith.constant 0 : index
    %1 = vector.load %arg2[%c0_1, %c0_2] : memref<8x128xf32, #tpu.memory_space<vmem>>, vector<8x128xf32>
    %cst = arith.constant dense<0.000000e+00> : vector<8x128xf32>
    %2 = tpu.matmul %0, %1, %cst {dimension_numbers = #tpu.dot_dimension_numbers<[1], [0], [0], [1], [0, 0, 1, 1], [], []>, precision = #tpu.contract_precision<fp32>} : vector<8x8xf32>, vector<8x128xf32>, vector<8x128xf32> -> vector<8x128xf32>
    %c0_3 = arith.constant 0 : index
    %c0_4 = arith.constant 0 : index
    %3 = vector.load %arg3[%c0_3, %c0_4] : memref<1x128xf32, #tpu.memory_space<vmem>>, vector<1x128xf32>
    %4 = vector.broadcast %3 : vector<1x128xf32> to vector<8x128xf32>
    %5 = arith.addf %2, %4 : vector<8x128xf32>
    %cst_5 = arith.constant 0.000000e+00 : f32
    %6 = vector.broadcast %cst_5 : f32 to vector<8x128xf32>
    %7 = arith.maximumf %5, %6 : vector<8x128xf32>
    %c0_6 = arith.constant 0 : index
    %c0_7 = arith.constant 0 : index
    %8 = vector.load %arg4[%c0_6, %c0_7] : memref<128x128xf32, #tpu.memory_space<vmem>>, vector<128x128xf32>
    %cst_8 = arith.constant dense<0.000000e+00> : vector<8x128xf32>
    %9 = tpu.matmul %7, %8, %cst_8 {dimension_numbers = #tpu.dot_dimension_numbers<[1], [0], [0], [1], [0, 0, 1, 1], [], []>, precision = #tpu.contract_precision<fp32>} : vector<8x128xf32>, vector<128x128xf32>, vector<8x128xf32> -> vector<8x128xf32>
    %c0_9 = arith.constant 0 : index
    %c0_10 = arith.constant 0 : index
    %10 = vector.load %arg5[%c0_9, %c0_10] : memref<1x128xf32, #tpu.memory_space<vmem>>, vector<1x128xf32>
    %11 = vector.broadcast %10 : vector<1x128xf32> to vector<8x128xf32>
    %12 = arith.addf %9, %11 : vector<8x128xf32>
    %cst_11 = arith.constant 0.000000e+00 : f32
    %13 = vector.broadcast %cst_11 : f32 to vector<8x128xf32>
    %14 = arith.maximumf %12, %13 : vector<8x128xf32>
    %c0_12 = arith.constant 0 : index
    %c0_13 = arith.constant 0 : index
    %15 = vector.load %arg6[%c0_12, %c0_13] : memref<128x4xf32, #tpu.memory_space<vmem>>, vector<128x4xf32>
    %cst_14 = arith.constant dense<0.000000e+00> : vector<8x4xf32>
    %16 = tpu.matmul %14, %15, %cst_14 {dimension_numbers = #tpu.dot_dimension_numbers<[1], [0], [0], [1], [0, 0, 1, 1], [], []>, precision = #tpu.contract_precision<fp32>} : vector<8x128xf32>, vector<128x4xf32>, vector<8x4xf32> -> vector<8x4xf32>
    %c0_15 = arith.constant 0 : index
    %c0_16 = arith.constant 0 : index
    %17 = vector.load %arg7[%c0_15, %c0_16] : memref<1x4xf32, #tpu.memory_space<vmem>>, vector<1x4xf32>
    %18 = vector.broadcast %17 : vector<1x4xf32> to vector<8x4xf32>
    %19 = arith.addf %16, %18 : vector<8x4xf32>
    %20 = math.tanh %19 : vector<8x4xf32>
    %c0_17 = arith.constant 0 : index
    %c0_18 = arith.constant 0 : index
    %21 = vector.load %arg8[%c0_17, %c0_18] : memref<8x4xf32, #tpu.memory_space<vmem>>, vector<8x4xf32>
    tpu.vector_store %arg8[%c0_17, %c0_18], %20 {strides = array<i32>} : memref<8x4xf32, #tpu.memory_space<vmem>>, vector<8x4xf32>,
    return
  }
  func.func @transform_0(%arg0: i32) -> (i32, i32) {
    %c0_i32 = arith.constant 0 : i32
    %c0_i32_0 = arith.constant 0 : i32
    return %arg0, %c0_i32 : i32, i32
  }
  func.func @transform_1(%arg0: i32) -> (i32, i32) {
    %c0_i32 = arith.constant 0 : i32
    %c0_i32_0 = arith.constant 0 : i32
    %c0_i32_1 = arith.constant 0 : i32
    return %c0_i32, %c0_i32_0 : i32, i32
  }
  func.func @transform_2(%arg0: i32) -> (i32, i32) {
    %c0_i32 = arith.constant 0 : i32
    %c0_i32_0 = arith.constant 0 : i32
    %c0_i32_1 = arith.constant 0 : i32
    return %c0_i32, %c0_i32_0 : i32, i32
  }
  func.func @transform_3(%arg0: i32) -> (i32, i32) {
    %c0_i32 = arith.constant 0 : i32
    %c0_i32_0 = arith.constant 0 : i32
    %c0_i32_1 = arith.constant 0 : i32
    return %c0_i32, %c0_i32_0 : i32, i32
  }
  func.func @transform_4(%arg0: i32) -> (i32, i32) {
    %c0_i32 = arith.constant 0 : i32
    %c0_i32_0 = arith.constant 0 : i32
    %c0_i32_1 = arith.constant 0 : i32
    return %c0_i32, %c0_i32_0 : i32, i32
  }
  func.func @transform_5(%arg0: i32) -> (i32, i32) {
    %c0_i32 = arith.constant 0 : i32
    %c0_i32_0 = arith.constant 0 : i32
    %c0_i32_1 = arith.constant 0 : i32
    return %c0_i32, %c0_i32_0 : i32, i32
  }
  func.func @transform_6(%arg0: i32) -> (i32, i32) {
    %c0_i32 = arith.constant 0 : i32
    %c0_i32_0 = arith.constant 0 : i32
    %c0_i32_1 = arith.constant 0 : i32
    return %c0_i32, %c0_i32_0 : i32, i32
  }
  func.func @transform_7(%arg0: i32) -> (i32, i32) {
    %c0_i32 = arith.constant 0 : i32
    %c0_i32_0 = arith.constant 0 : i32
    return %arg0, %c0_i32 : i32, i32
  }
}

</mosaic_0001>

<bundles_post_ra>
// kernel: actor_forward.1
= control target key start
LH: loop header
LB: loop body
LE: loop exit
PB: predicated region body
PF: predicated region fallthrough
CT: control target
= control target key end

     0   :  { %12 = vsyncpa [#allocation3], 0  ;;  %s3510_s0 = inlined_call_operand.hbm [shape: f32[2,8], index: 0, kind: input, shape index: {}]   ;;  %s3511_s1 = inlined_call_operand.vmem [shape: f32[8,128], index: 1, kind: input, shape index: {}]   ;;  %s3512_s2 = inlined_call_operand.vmem [shape: f32[1,128], index: 2, kind: input, shape index: {}]   ;;  %s3513_s3 = inlined_call_operand.vmem [shape: f32[128,128], index: 3, kind: input, shape index: {}]   ;;  %s3514_s4 = inlined_call_operand.hbm [shape: f32[1,128], index: 4, kind: input, shape index: {}]   ;;  %s3515_s5 = inlined_call_operand.vmem [shape: f32[128,4], index: 5, kind: input, shape index: {}]   ;;  %s3516_s6 = inlined_call_operand.vmem [shape: f32[1,4], index: 6, kind: input, shape index: {}]   ;;  %s3517_s7 = inlined_call_operand.hbm [shape: f32[2,4], index: 7, kind: output, shape index: {}]  }
   0x1   :  { %13 = vsyncpa [#allocation6], 0 }
   0x2   :  { %14 = vsyncpa [#allocation4], 0 }
   0x3   :  { %19 = vsyncadd [#allocation3], 96  ;;  %s2607_s24 = smov [#allocation2]  }
   0x4   :  { %s20_s25 = sshll.u32 %s2607_s24, 4  ;;  %s21_s25 = int_to_ptr.vmem [resolvable:$true] %s20_s25 }
   0x5   :  { %s2549_s26 = scalar_lea.vmem %s21_s25, 32  ;;  %s2553_s27 = scalar_lea.vmem %s21_s25, 128 }
   0x6   :  { %p2550_p0 = scmp.ne.s32.totalorder %s21_s25, %s2549_s26  ;;  %p2554_p1 = scmp.lt.s32.totalorder %s21_s25, %s21_s25 }
   0x7   :  { %p2555_p2 = scmp.lt.s32.totalorder %s2553_s27, %s2549_s26 }
   0x9   :  { %p2556_p3 = por %p2555_p2, %p2554_p1 }
   0xb   :  { %p2557_p4 = pnand %p2556_p3, %p2550_p0 }
   0xd   :  { %2560 = shalt.err (!%p2557_p4)
}
   0xe   :  { %s2608_s28 = smov 32   ;;  %s2609_s29 = smov 2  }
   0xf   :  { %26 = dma.hbm_to_vmem [thread:$0]  %s3510_s0, 32, %s21_s25, [#allocation3], %s2608_s28, %s2608_s28, %s2609_s29  }
  0x10   :  { %s2610_s9 = smov [#allocation5]  }
  0x11   :  { %s39_s10 = sshll.u32 %s2610_s9, 4  ;;  %s40_s10 = int_to_ptr.vmem [resolvable:$true] %s39_s10 }
  0x12   :  { %s2569_s11 = scalar_lea.vmem %s40_s10, 16  ;;  %s2573_s12 = scalar_lea.vmem %s40_s10, 32 }
  0x13   :  { %p2570_p5 = scmp.ne.s32.totalorder %s40_s10, %s2569_s11  ;;  %p2574_p6 = scmp.lt.s32.totalorder %s40_s10, %s40_s10 }
  0x14   :  { %p2575_p7 = scmp.lt.s32.totalorder %s2573_s12, %s2569_s11 }
  0x16   :  { %p2576_p8 = por %p2575_p7, %p2574_p6 }
  0x18   :  { %p2577_p9 = pnand %p2576_p8, %p2570_p5 }
  0x1a   :  { %2580 = shalt.err (!%p2577_p9)
}
  0x1b   :  { %42 = dma.hbm_to_vmem [thread:$0]  %s3514_s4, 16, %s40_s10, [#allocation6]  }
  0x1c   :  { %2601 = dma.done.wait [#allocation3], 128  }
  0x1d   :  { %2602 = vsyncadd [#allocation3], 4294967168 }
  0x1e   :  { %2603 = dma.done.wait [#allocation6], 16  }
  0x1f   :  { %2604 = vsyncadd [#allocation6], 4294967280  ;;  %v2611_v0 = vmov 0.0   ;;  %vm2612_vm0 = vmmov 0   ;;  %vm62_vm1 = vcmask 64512   ;;  %v54_v1 = vld [vmem:[%s3511_s1] sm:$0xff] }
  0x20   :  { %2082 = vmatprep.subr.mxu0 %v2611_v0  ;;  %2087 = vmatprep.subr.mxu1 %v2611_v0  ;;  %v53_v2 = vld [vmem:[#allocation2] sm:$0xff]  ;;  %v528_v3 = vld [vmem:[%s3513_s3 + $0x78] sm:$0xff]  ;;  %v97_v4 = vand.u32 4294901760, %v54_v1  ;;  %v527_v7 = vld [vmem:[%s3513_s3 + $0x70] sm:$0xff]  ;;  %vm1843_vm2 = vcmask 31744  }
  0x21   :  { %2084 = vmatprep.mubr.msk.f32.mxu0 %vm2612_vm0, %v2611_v0  ;;  %2089 = vmatprep.mubr.msk.f32.mxu1 %vm2612_vm0, %v2611_v0  ;;  %v64_v5 = vsel %vm62_vm1, %v53_v2, 0  ;;  %v2675_v6 = vand.u32 4294901760, %v528_v3  ;;  %v526_v9 = vld [vmem:[%s3513_s3 + $0x68] sm:$0xff]  ;;  %v2683_v11 = vand.u32 4294901760, %v527_v7  ;;  %v525_v13 = vld [vmem:[%s3513_s3 + $0x60] sm:$0xff]  ;;  %v524_v18 = vld [vmem:[%s3513_s3 + $0x58] sm:$0xff] }
  0x22   :  { %v132_v8 = vand.u32 4294901760, %v64_v5  ;;  %2083 = vmatpush3.msra.mxu0 %v97_v4  ;;  %v174_v10 = vsub.f32 %v54_v1, %v97_v4  ;;  %v2692_v16 = vand.u32 4294901760, %v526_v9  ;;  %v2700_v21 = vand.u32 4294901760, %v525_v13  ;;  %v523_v23 = vld [vmem:[%s3513_s3 + $0x50] sm:$0xff]  ;;  %v522_v29 = vld [vmem:[%s3513_s3 + $0x48] sm:$0xff]  ;;  %v521_v33 = vld [vmem:[%s3513_s3 + $0x40] sm:$0xff] }
  0x23   :  { %2092 = vmatprep.subr.mxu0 %v2611_v0  ;;  %v2690_v15 = vsub.f32 %v528_v3, %v2675_v6  ;;  %v2698_v20 = vsub.f32 %v527_v7, %v2683_v11  ;;  %v2709_v27 = vand.u32 4294901760, %v524_v18  ;;  %v2718_v32 = vand.u32 4294901760, %v523_v23  ;;  %v520_v62 = vld [vmem:[%s3513_s3 + $0x38] sm:$0xff]  ;;  %v519_v1 = vld [vmem:[%s3513_s3 + $0x30] sm:$0xff] }
  0x24   :  { %v133_v12 = vsub.f32 %v64_v5, %v132_v8  ;;  %v175_v14 = vand.u32 4294901760, %v174_v10  ;;  %v2707_v26 = vsub.f32 %v526_v9, %v2692_v16  ;;  %v2716_v31 = vsub.f32 %v525_v13, %v2700_v21  ;;  %v517_v9 = vld [vmem:[%s3513_s3 + $0x20] sm:$0xff] }
  0x25   :  { %v630_v25 = vand.u32 4294901760, %v2690_v15  ;;  %v637_v30 = vand.u32 4294901760, %v2698_v20  ;;  %v2729_v36 = vsub.f32 %v524_v18, %v2709_v27  ;;  %v2731_v37 = vand.u32 4294901760, %v522_v29 }
  0x26   :  { %v134_v17 = vand.u32 4294901760, %v133_v12  ;;  %v176_v19 = vsub.f32 %v174_v10, %v175_v14  ;;  %v644_v35 = vand.u32 4294901760, %v2707_v26  ;;  %v651_v39 = vand.u32 4294901760, %v2716_v31 }
  0x27   :  { %v631_v34 = vsub.f32 %v2690_v15, %v630_v25  ;;  %v638_v38 = vsub.f32 %v2698_v20, %v637_v30  ;;  %v2743_v40 = vsub.f32 %v523_v23, %v2718_v32  ;;  %v2745_v41 = vand.u32 4294901760, %v521_v33 }
  0x28   :  { %v135_v22 = vsub.f32 %v133_v12, %v134_v17  ;;  %v177_v24 = vand.u32 4294901760, %v176_v19  ;;  %v645_v43 = vsub.f32 %v2707_v26, %v644_v35  ;;  %v658_v44 = vand.u32 4294901760, %v2729_v36 }
  0x29   :  { %v632_v42 = vand.u32 4294901760, %v631_v34  ;;  %v2753_v45 = vsub.f32 %v522_v29, %v2731_v37  ;;  %v639_v46 = vand.u32 4294901760, %v638_v38  ;;  %v652_v47 = vsub.f32 %v2716_v31, %v651_v39 }
  0x2a   :  { %v136_v28 = vand.u32 4294901760, %v135_v22  ;;  %2088 = vmatpush3.msra.mxu1 %v177_v24  ;;  %v665_v48 = vand.u32 4294901760, %v2743_v40  ;;  %v2765_v49 = vsub.f32 %v521_v33, %v2745_v41  ;;  %v646_v50 = vand.u32 4294901760, %v645_v43  ;;  %v514_v43 = vld [vmem:[%s3513_s3 + $0x8] sm:$0xff] }
  0x2b   :  { %2090 = vmatmul.mubr.f32.vlgmr.msra.gmra.mxu1 %v132_v8  ;;  %2097 = vmatprep.subr.mxu1 %v2611_v0  ;;  %v659_v51 = vsub.f32 %v2729_v36, %v658_v44  ;;  %v672_v52 = vand.u32 4294901760, %v2753_v45  ;;  %v653_v53 = vand.u32 4294901760, %v652_v47  ;;  %v2813_v63 = vand.u32 4294901760, %v520_v62 }
  0x2c   :  { %2085 = vmatmul.mubr.f32.vlgmr.msra.gmra.mxu0 %v136_v28  ;;  %2098 = vmatpush3.msra.mxu1 %v97_v4  ;;  %v666_v54 = vsub.f32 %v2743_v40, %v665_v48  ;;  %v679_v55 = vand.u32 4294901760, %v2765_v49  ;;  %v2821_v3 = vand.u32 4294901760, %v519_v1  ;;  %v515_v28 = vld [vmem:[%s3513_s3 + $0x10] sm:$0xff] }
  0x2d   :  { %2093 = vmatpush3.msra.mxu0 %v174_v10  ;;  %2094 = vmatprep.mubr.msk.f32.mxu0 %vm2612_vm0, %v2611_v0  ;;  %v660_v56 = vand.u32 4294901760, %v659_v51  ;;  %v673_v57 = vsub.f32 %v2753_v45, %v672_v52  ;;  %v2819_v2 = vsub.f32 %v520_v62, %v2813_v63  ;;  %v2871_v38 = vand.u32 4294901760, %v515_v28 }
  0x2e   :  { %2099 = vmatprep.mubr.msk.f32.mxu1 %vm2612_vm0, %v2611_v0  ;;  %2102 = vmatprep.subr.mxu0 %v2611_v0  ;;  %v667_v58 = vand.u32 4294901760, %v666_v54  ;;  %v680_v59 = vsub.f32 %v2765_v49, %v679_v55  ;;  %v2830_v7 = vsub.f32 %v519_v1, %v2821_v3  ;;  %v2887_v51 = vand.u32 4294901760, %v514_v43  ;;  %v513_v54 = vld [vmem:[%s3513_s3] sm:$0xff] }
  0x2f   :  { %2100 = vmatmul.mubr.f32.vlgmr.msra.gmra.mxu1 %v134_v17  ;;  %2107 = vmatprep.subr.mxu1 %v2611_v0  ;;  %v674_v60 = vand.u32 4294901760, %v673_v57  ;;  %v686_v5 = vand.u32 4294901760, %v2819_v2  ;;  %v516_v17 = vld [vmem:[%s3513_s3 + $0x18] sm:$0xff] }
  0x30   :  { %2095 = vmatmul.mubr.f32.vlgmr.msra.gmra.mxu0 %v133_v12  ;;  %2108 = vmatpush3.msra.mxu1 %v97_v4  ;;  %v681_v61 = vand.u32 4294901760, %v680_v59  ;;  %v518_v4 = vld [vmem:[%s3513_s3 + $0x28] sm:$0xff]  ;;  %v693_v12 = vand.u32 4294901760, %v2830_v7  ;;  %v2861_v24 = vand.u32 4294901760, %v516_v17  ;;  %v2900_v59 = vand.u32 4294901760, %v513_v54 }
  0x31   :  { %2103 = vmatpush3.msra.mxu0 %v175_v14  ;;  %2104 = vmatprep.mubr.msk.f32.mxu0 %vm2612_vm0, %v2611_v0  ;;  %v687_v10 = vsub.f32 %v2819_v2, %v686_v5  ;;  %v2846_v14 = vand.u32 4294901760, %v517_v9 }
  0x32   :  { %2109 = vmatprep.mubr.msk.f32.mxu1 %vm2612_vm0, %v2611_v0  ;;  %2147 = vmatprep.subr.mxu1 %v2611_v0  ;;  %v694_v19 = vsub.f32 %v2830_v7, %v693_v12  ;;  %v2913_v1 = vsub.f32 %v513_v54, %v2900_v59 }
  0x33   :  { %2110 = vmatmul.mubr.f32.vlgmr.msra.gmra.mxu1 %v132_v8  ;;  %2112 = vmatprep.subr.mxu0 %v2611_v0  ;;  %v688_v18 = vand.u32 4294901760, %v687_v10  ;;  %v2858_v23 = vsub.f32 %v517_v9, %v2846_v14 }
  0x34   :  { %2105 = vmatmul.mubr.f32.vlgmr.msra.gmra.mxu0 %v132_v8  ;;  %2148 = vmatpush3.msra.mxu1 %v632_v42  ;;  %v2832_v8 = vand.u32 4294901760, %v518_v4  ;;  %v695_v29 = vand.u32 4294901760, %v694_v19  ;;  %v2875_v42 = vsub.f32 %v516_v17, %v2861_v24  ;;  %v3518_v17 = vand.u32 4294901760, %v2913_v1 }
  0x35   :  { %2149 = vmatprep.subr.mxu1 %v2611_v0  ;;  %2113 = vmatpush3.msra.mxu0 %v2675_v6  ;;  %v3522_v34 = vand.u32 4294901760, %v2858_v23 }
  0x36   :  { %2150 = vmatpush3.msra.mxu1 %v639_v46  ;;  %2114 = vmatprep.subr.mxu0 %v2611_v0  ;;  %v2844_v13 = vsub.f32 %v518_v4, %v2832_v8  ;;  %v736_v19 = vsub.f32 %v2913_v1, %v3518_v17 }
  0x37   :  { %2151 = vmatprep.subr.mxu1 %v2611_v0  ;;  %2115 = vmatpush3.msra.mxu0 %v2683_v11  ;;  %v708_v47 = vsub.f32 %v2858_v23, %v3522_v34 }
  0x38   :  { %2152 = vmatpush3.msra.mxu1 %v646_v50  ;;  %2116 = vmatprep.subr.mxu0 %v2611_v0  ;;  %v3523_v22 = vand.u32 4294901760, %v2844_v13  ;;  %v2885_v50 = vsub.f32 %v515_v28, %v2871_v38  ;;  %v737_v28 = vand.u32 4294901760, %v736_v19 }
  0x39   :  { %2153 = vmatprep.subr.mxu1 %v2611_v0  ;;  %2117 = vmatpush3.msra.mxu0 %v2692_v16 }
  0x3a   :  { %2154 = vmatpush3.msra.mxu1 %v653_v53  ;;  %2118 = vmatprep.subr.mxu0 %v2611_v0  ;;  %v701_v33 = vsub.f32 %v2844_v13, %v3523_v22  ;;  %v3521_v53 = vand.u32 4294901760, %v2875_v42  ;;  %v3520_v57 = vand.u32 4294901760, %v2885_v50 }
  0x3b   :  { %2155 = vmatprep.subr.mxu1 %v2611_v0  ;;  %2119 = vmatpush3.msra.mxu0 %v2700_v21 }
  0x3c   :  { %2156 = vmatpush3.msra.mxu1 %v660_v56  ;;  %2120 = vmatprep.subr.mxu0 %v2611_v0  ;;  %v702_v46 = vand.u32 4294901760, %v701_v33  ;;  %v709_v56 = vand.u32 4294901760, %v708_v47 }
  0x3d   :  { %2157 = vmatprep.subr.mxu1 %v2611_v0  ;;  %2121 = vmatpush3.msra.mxu0 %v2709_v27 }
  0x3e   :  { %2158 = vmatpush3.msra.mxu1 %v667_v58  ;;  %2122 = vmatprep.subr.mxu0 %v2611_v0  ;;  %v2898_v58 = vsub.f32 %v514_v43, %v2887_v51 }
  0x3f   :  { %2159 = vmatprep.subr.mxu1 %v2611_v0  ;;  %2123 = vmatpush3.msra.mxu0 %v2718_v32 }
  0x40   :  { %2160 = vmatpush3.msra.mxu1 %v674_v60  ;;  %2124 = vmatprep.subr.mxu0 %v2611_v0  ;;  %v715_v60 = vsub.f32 %v2875_v42, %v3521_v53  ;;  %v3519_v62 = vand.u32 4294901760, %v2898_v58 }
  0x41   :  { %2161 = vmatprep.subr.mxu1 %v2611_v0  ;;  %2125 = vmatpush3.msra.mxu0 %v2731_v37 }
  0x42   :  { %2162 = vmatpush3.msra.mxu1 %v681_v61  ;;  %2126 = vmatprep.subr.mxu0 %v2611_v0  ;;  %v722_v61 = vsub.f32 %v2885_v50, %v3520_v57  ;;  %v716_v4 = vand.u32 4294901760, %v715_v60  ;;  %v729_v10 = vsub.f32 %v2898_v58, %v3519_v62 }
  0x43   :  { %2163 = vmatprep.subr.mxu1 %v2611_v0  ;;  %2127 = vmatpush3.msra.mxu0 %v2745_v41 }
  0x44   :  { %2128 = vmatprep.subr.mxu0 %v2611_v0  ;;  %2179 = vmatprep.mubr.msk.f32.mxu1 %vm2612_vm0, %v2611_v0  ;;  %v723_v9 = vand.u32 4294901760, %v722_v61 }
  0x45   :  { %2144 = vmatprep.mubr.msk.f32.mxu0 %vm2612_vm0, %v2611_v0  ;;  %2129 = vmatpush3.msra.mxu0 %v2813_v63 }
  0x46   :  { %2130 = vmatprep.subr.mxu0 %v2611_v0  ;;  %2164 = vmatpush3.msra.mxu1 %v688_v18  ;;  %v730_v18 = vand.u32 4294901760, %v729_v10 }
  0x47   :  { %2131 = vmatpush3.msra.mxu0 %v2821_v3  ;;  %2165 = vmatprep.subr.mxu1 %v2611_v0 }
  0x48   :  { %2132 = vmatprep.subr.mxu0 %v2611_v0  ;;  %2166 = vmatpush3.msra.mxu1 %v695_v29  ;;  %v1863_v29 = vld [vmem:[%s3512_s2] ss:$0 sm:$0xff] }
  0x49   :  { %2133 = vmatpush3.msra.mxu0 %v2832_v8  ;;  %2167 = vmatprep.subr.mxu1 %v2611_v0 }
  0x4a   :  { %2134 = vmatprep.subr.mxu0 %v2611_v0  ;;  %2168 = vmatpush3.msra.mxu1 %v702_v46 }
  0x4b   :  { %2135 = vmatpush3.msra.mxu0 %v2846_v14  ;;  %2169 = vmatprep.subr.mxu1 %v2611_v0 }
  0x4c   :  { %2136 = vmatprep.subr.mxu0 %v2611_v0  ;;  %2170 = vmatpush3.msra.mxu1 %v709_v56 }
  0x4d   :  { %2137 = vmatpush3.msra.mxu0 %v2861_v24  ;;  %2171 = vmatprep.subr.mxu1 %v2611_v0 }
  0x4e   :  { %2138 = vmatprep.subr.mxu0 %v2611_v0  ;;  %2172 = vmatpush3.msra.mxu1 %v716_v4 }
  0x4f   :  { %2139 = vmatpush3.msra.mxu0 %v2871_v38  ;;  %2173 = vmatprep.subr.mxu1 %v2611_v0 }
  0x50   :  { %2140 = vmatprep.subr.mxu0 %v2611_v0  ;;  %2174 = vmatpush3.msra.mxu1 %v723_v9 }
  0x51   :  { %2141 = vmatpush3.msra.mxu0 %v2887_v51  ;;  %2175 = vmatprep.subr.mxu1 %v2611_v0 }
  0x52   :  { %2142 = vmatprep.subr.mxu0 %v2611_v0  ;;  %2176 = vmatpush3.msra.mxu1 %v730_v18 }
  0x53   :  { %2143 = vmatpush3.msra.mxu0 %v2900_v59  ;;  %2177 = vmatprep.subr.mxu1 %v2611_v0 }
  0x54   :  { %2182 = vmatprep.subr.mxu0 %v2611_v0  ;;  %2178 = vmatpush3.msra.mxu1 %v737_v28 }
  0x55   :  { %2217 = vmatprep.subr.mxu1 %v2611_v0 }
  0xeb   :  { %v214_v43 = vpop.f32.mrf.mxu1 }
  0xec   :  { %v138_v33 = vpop.f32.mrf.mxu0 }
  0xed   :  { %v139_v46 = vadd.f32 %v1863_v29, %v138_v33  ;;  %v2091_v54 = vpop.f32.mrf.mxu1 }
  0xee   :  { %v2086_v47 = vpop.f32.mrf.mxu0 }
  0xef   :  { %v215_v56 = vadd.f32 %v214_v43, %v139_v46  ;;  %v362_v61 = vpop.f32.mrf.mxu1 }
  0xf0   :  { %v288_v60 = vpop.f32.mrf.mxu0 }
  0xf1   :  { %v289_v4 = vadd.f32 %v288_v60, %v215_v56  ;;  %v2101_v10 = vpop.f32.mrf.mxu1  ;;  %v1185_v56 = vld [vmem:[%s3515_s5 + $0x38] sm:$0xff] }
  0xf2   :  { %v2096_v9 = vpop.f32.mrf.mxu0 }
  0xf3   :  { %v363_v18 = vadd.f32 %v362_v61, %v289_v4  ;;  %v508_v28 = vpop.f32.mrf.mxu1  ;;  %v3216_v4 = vand.u32 4294901760, %v1185_v56  ;;  %v1184_v9 = vld [vmem:[%s3515_s5 + $0x30] sm:$0xff] }
  0xf4   :  { %v436_v19 = vpop.f32.mrf.mxu0 }
  0xf5   :  { %v437_v17 = vadd.f32 %v436_v19, %v363_v18  ;;  %v2111_v57 = vpop.f32.mrf.mxu1  ;;  %v3225_v18 = vsub.f32 %v1185_v56, %v3216_v4  ;;  %v3227_v19 = vand.u32 4294901760, %v1184_v9 }
  0xf6   :  { %v2106_v62 = vpop.f32.mrf.mxu0 }
  0xf7   :  { %v509_v53 = vadd.f32 %v508_v28, %v437_v17  ;;  %v1183_v28 = vld [vmem:[%s3515_s5 + $0x28] sm:$0xff] }
  0xf9   :  { %v512_v34 = vmax.f32 %v509_v53, 0.0 }
  0xfb   :  { %v2933_v22 = vand.u32 4294901760, %v512_v34 }
  0xfd   :  { %v2936_v29 = vsub.f32 %v512_v34, %v2933_v22  ;;  %2180 = vmatmul.mubr.f32.vlgmr.msra.gmra.mxu1 %v2933_v22 }
  0xfe   :  { %2218 = vmatpush3.msra.mxu1 %v2675_v6  ;;  %2249 = vmatprep.mubr.msk.f32.mxu1 %vm2612_vm0, %v2611_v0 }
  0xff   :  { %v619_v33 = vand.u32 4294901760, %v2936_v29  ;;  %2219 = vmatprep.subr.mxu1 %v2611_v0 }
 0x100   :  { %2220 = vmatpush3.msra.mxu1 %v2683_v11 }
 0x101   :  { %v620_v53 = vsub.f32 %v2936_v29, %v619_v33  ;;  %2221 = vmatprep.subr.mxu1 %v2611_v0 }
 0x102   :  { %2222 = vmatpush3.msra.mxu1 %v2692_v16 }
 0x103   :  { %2223 = vmatprep.subr.mxu1 %v2611_v0  ;;  %v621_v34 = vand.u32 4294901760, %v620_v53  ;;  %v3237_v53 = vsub.f32 %v1184_v9, %v3227_v19 }
 0x104   :  { %2224 = vmatpush3.msra.mxu1 %v2700_v21 }
 0x105   :  { %2225 = vmatprep.subr.mxu1 %v2611_v0  ;;  %2145 = vmatmul.mubr.f32.vlgmr.msra.gmra.mxu0 %v621_v34  ;;  %v3239_v34 = vand.u32 4294901760, %v1183_v28 }
 0x106   :  { %2183 = vmatpush3.msra.mxu0 %v2690_v15  ;;  %2226 = vmatpush3.msra.mxu1 %v2709_v27  ;;  %v3532_v15 = vand.u32 4294901760, %v2875_v42 }
 0x107   :  { %2184 = vmatprep.subr.mxu0 %v2611_v0  ;;  %2227 = vmatprep.subr.mxu1 %v2611_v0 }
 0x108   :  { %2185 = vmatpush3.msra.mxu0 %v2698_v20  ;;  %2228 = vmatpush3.msra.mxu1 %v2718_v32  ;;  %v3534_v20 = vand.u32 4294901760, %v2898_v58 }
 0x109   :  { %2186 = vmatprep.subr.mxu0 %v2611_v0  ;;  %2229 = vmatprep.subr.mxu1 %v2611_v0 }
 0x10a   :  { %2187 = vmatpush3.msra.mxu0 %v2707_v26  ;;  %2230 = vmatpush3.msra.mxu1 %v2731_v37 }
 0x10b   :  { %2188 = vmatprep.subr.mxu0 %v2611_v0  ;;  %2231 = vmatprep.subr.mxu1 %v2611_v0 }
 0x10c   :  { %2189 = vmatpush3.msra.mxu0 %v2716_v31  ;;  %2232 = vmatpush3.msra.mxu1 %v2745_v41 }
 0x10d   :  { %2190 = vmatprep.subr.mxu0 %v2611_v0  ;;  %2233 = vmatprep.subr.mxu1 %v2611_v0 }
 0x10e   :  { %2191 = vmatpush3.msra.mxu0 %v2729_v36  ;;  %2234 = vmatpush3.msra.mxu1 %v2813_v63  ;;  %v1189_v36 = vld [vmem:[%s3515_s5 + $0x58] sm:$0xff] }
 0x10f   :  { %2192 = vmatprep.subr.mxu0 %v2611_v0  ;;  %2235 = vmatprep.subr.mxu1 %v2611_v0 }
 0x110   :  { %2193 = vmatpush3.msra.mxu0 %v2743_v40  ;;  %2236 = vmatpush3.msra.mxu1 %v2821_v3  ;;  %v3127_v40 = vand.u32 4294901760, %v1189_v36 }
 0x111   :  { %2194 = vmatprep.subr.mxu0 %v2611_v0  ;;  %2237 = vmatprep.subr.mxu1 %v2611_v0 }
 0x112   :  { %2195 = vmatpush3.msra.mxu0 %v2753_v45  ;;  %2238 = vmatpush3.msra.mxu1 %v2832_v8  ;;  %v1186_v45 = vld [vmem:[%s3515_s5 + $0x40] sm:$0xff] }
 0x113   :  { %2196 = vmatprep.subr.mxu0 %v2611_v0  ;;  %2239 = vmatprep.subr.mxu1 %v2611_v0 }
 0x114   :  { %2197 = vmatpush3.msra.mxu0 %v2765_v49  ;;  %2240 = vmatpush3.msra.mxu1 %v2846_v14 }
 0x115   :  { %2198 = vmatprep.subr.mxu0 %v2611_v0  ;;  %2241 = vmatprep.subr.mxu1 %v2611_v0 }
 0x116   :  { %2199 = vmatpush3.msra.mxu0 %v2819_v2  ;;  %2242 = vmatpush3.msra.mxu1 %v2861_v24 }
 0x117   :  { %2200 = vmatprep.subr.mxu0 %v2611_v0  ;;  %2243 = vmatprep.subr.mxu1 %v2611_v0 }
 0x118   :  { %2201 = vmatpush3.msra.mxu0 %v2830_v7  ;;  %2244 = vmatpush3.msra.mxu1 %v2871_v38 }
 0x119   :  { %2202 = vmatprep.subr.mxu0 %v2611_v0  ;;  %2245 = vmatprep.subr.mxu1 %v2611_v0 }
 0x11a   :  { %2203 = vmatpush3.msra.mxu0 %v2844_v13  ;;  %2246 = vmatpush3.msra.mxu1 %v2887_v51 }
 0x11b   :  { %2204 = vmatprep.subr.mxu0 %v2611_v0  ;;  %2247 = vmatprep.subr.mxu1 %v2611_v0 }
 0x11c   :  { %2205 = vmatpush3.msra.mxu0 %v2858_v23  ;;  %2248 = vmatpush3.msra.mxu1 %v2900_v59 }
 0x11d   :  { %2206 = vmatprep.subr.mxu0 %v2611_v0  ;;  %2250 = vmatmul.mubr.f32.vlgmr.msra.gmra.mxu1 %v619_v33  ;;  %v1351_v33 = vand.u32 4294901760, %v3225_v18 }
 0x11e   :  { %2287 = vmatprep.subr.mxu1 %v2611_v0  ;;  %2207 = vmatpush3.msra.mxu0 %v2875_v42 }
 0x11f   :  { %2288 = vmatpush3.msra.mxu1 %v2675_v6  ;;  %2208 = vmatprep.subr.mxu0 %v2611_v0  ;;  %v3530_v6 = vand.u32 4294901760, %v2844_v13 }
 0x120   :  { %2289 = vmatprep.subr.mxu1 %v2611_v0  ;;  %2209 = vmatpush3.msra.mxu0 %v2885_v50 }
 0x121   :  { %2290 = vmatpush3.msra.mxu1 %v2683_v11  ;;  %2210 = vmatprep.subr.mxu0 %v2611_v0  ;;  %v3531_v11 = vand.u32 4294901760, %v2858_v23 }
 0x122   :  { %2291 = vmatprep.subr.mxu1 %v2611_v0  ;;  %2211 = vmatpush3.msra.mxu0 %v2898_v58 }
 0x123   :  { %2292 = vmatpush3.msra.mxu1 %v2692_v16  ;;  %2212 = vmatprep.subr.mxu0 %v2611_v0  ;;  %v3533_v16 = vand.u32 4294901760, %v2885_v50 }
 0x124   :  { %2293 = vmatprep.subr.mxu1 %v2611_v0  ;;  %2213 = vmatpush3.msra.mxu0 %v2913_v1 }
 0x125   :  { %2214 = vmatprep.mubr.msk.f32.mxu0 %vm2612_vm0, %v2611_v0  ;;  %2294 = vmatpush3.msra.mxu1 %v2700_v21  ;;  %v3535_v21 = vand.u32 4294901760, %v2913_v1 }
 0x126   :  { %2215 = vmatmul.mubr.f32.vlgmr.msra.gmra.mxu0 %v2936_v29  ;;  %2252 = vmatprep.subr.mxu0 %v2611_v0 }
 0x127   :  { %2295 = vmatprep.subr.mxu1 %v2611_v0  ;;  %2253 = vmatpush3.msra.mxu0 %v630_v25  ;;  %v1193_v25 = vld [vmem:[%s3515_s5 + $0x78] sm:$0xff] }
 0x128   :  { %2296 = vmatpush3.msra.mxu1 %v2709_v27  ;;  %2254 = vmatprep.subr.mxu0 %v2611_v0  ;;  %v3103_v26 = vand.u32 4294901760, %v1193_v25  ;;  %v1192_v27 = vld [vmem:[%s3515_s5 + $0x70] sm:$0xff] }
 0x129   :  { %2297 = vmatprep.subr.mxu1 %v2611_v0  ;;  %2255 = vmatpush3.msra.mxu0 %v637_v30  ;;  %v3111_v31 = vand.u32 4294901760, %v1192_v27 }
 0x12a   :  { %2298 = vmatpush3.msra.mxu1 %v2718_v32  ;;  %2256 = vmatprep.subr.mxu0 %v2611_v0  ;;  %v3109_v30 = vsub.f32 %v1193_v25, %v3103_v26  ;;  %v1191_v32 = vld [vmem:[%s3515_s5 + $0x68] sm:$0xff] }
 0x12b   :  { %2299 = vmatprep.subr.mxu1 %v2611_v0  ;;  %2257 = vmatpush3.msra.mxu0 %v644_v35  ;;  %v1190_v35 = vld [vmem:[%s3515_s5 + $0x60] sm:$0xff]  ;;  %v3141_v49 = vsub.f32 %v1192_v27, %v3111_v31 }
 0x12c   :  { %2300 = vmatpush3.msra.mxu1 %v2731_v37  ;;  %2258 = vmatprep.subr.mxu0 %v2611_v0  ;;  %v3123_v37 = vand.u32 4294901760, %v1191_v32 }
 0x12d   :  { %2301 = vmatprep.subr.mxu1 %v2611_v0  ;;  %2259 = vmatpush3.msra.mxu0 %v651_v39  ;;  %v3125_v39 = vand.u32 4294901760, %v1190_v35 }
 0x12e   :  { %2302 = vmatpush3.msra.mxu1 %v2745_v41  ;;  %2260 = vmatprep.subr.mxu0 %v2611_v0  ;;  %v1188_v41 = vld [vmem:[%s3515_s5 + $0x50] sm:$0xff] }
 0x12f   :  { %2303 = vmatprep.subr.mxu1 %v2611_v0  ;;  %2261 = vmatpush3.msra.mxu0 %v658_v44  ;;  %v1187_v44 = vld [vmem:[%s3515_s5 + $0x48] sm:$0xff]  ;;  %v3152_v2 = vsub.f32 %v1190_v35, %v3125_v39 }
 0x130   :  { %2304 = vmatpush3.msra.mxu1 %v2813_v63  ;;  %2262 = vmatprep.subr.mxu0 %v2611_v0  ;;  %v3149_v63 = vsub.f32 %v1191_v32, %v3123_v37 }
 0x131   :  { %2305 = vmatprep.subr.mxu1 %v2611_v0  ;;  %2263 = vmatpush3.msra.mxu0 %v665_v48  ;;  %v1295_v48 = vand.u32 4294901760, %v3109_v30 }
 0x132   :  { %2306 = vmatpush3.msra.mxu1 %v2821_v3  ;;  %2264 = vmatprep.subr.mxu0 %v2611_v0  ;;  %v3155_v3 = vsub.f32 %v1189_v36, %v3127_v40 }
 0x133   :  { %2307 = vmatprep.subr.mxu1 %v2611_v0  ;;  %2265 = vmatpush3.msra.mxu0 %v672_v52  ;;  %v3144_v52 = vand.u32 4294901760, %v1188_v41  ;;  %v1296_v7 = vsub.f32 %v3109_v30, %v1295_v48 }
 0x134   :  { %2308 = vmatpush3.msra.mxu1 %v2832_v8  ;;  %2266 = vmatprep.subr.mxu0 %v2611_v0  ;;  %v1302_v8 = vand.u32 4294901760, %v3141_v49  ;;  %v1323_v23 = vand.u32 4294901760, %v3155_v3 }
 0x135   :  { %2309 = vmatprep.subr.mxu1 %v2611_v0  ;;  %2267 = vmatpush3.msra.mxu0 %v679_v55  ;;  %v3146_v55 = vand.u32 4294901760, %v1187_v44 }
 0x136   :  { %2310 = vmatpush3.msra.mxu1 %v2846_v14  ;;  %2268 = vmatprep.subr.mxu0 %v2611_v0  ;;  %v1309_v14 = vand.u32 4294901760, %v3149_v63 }
 0x137   :  { %2311 = vmatprep.subr.mxu1 %v2611_v0  ;;  %2269 = vmatpush3.msra.mxu0 %v686_v5  ;;  %v3158_v5 = vand.u32 4294901760, %v1186_v45  ;;  %v3169_v13 = vsub.f32 %v1187_v44, %v3146_v55 }
 0x138   :  { %2312 = vmatpush3.msra.mxu1 %v2861_v24  ;;  %2270 = vmatprep.subr.mxu0 %v2611_v0  ;;  %v1297_v24 = vand.u32 4294901760, %v1296_v7 }
 0x139   :  { %2313 = vmatprep.subr.mxu1 %v2611_v0  ;;  %2271 = vmatpush3.msra.mxu0 %v693_v12  ;;  %v3165_v12 = vsub.f32 %v1188_v41, %v3144_v52  ;;  %v3181_v50 = vsub.f32 %v1186_v45, %v3158_v5  ;;  %v1337_v62 = vand.u32 4294901760, %v3169_v13  ;;  %v1180_v41 = vld [vmem:[%s3515_s5 + $0x10] sm:$0xff] }
 0x13a   :  { %2314 = vmatpush3.msra.mxu1 %v2871_v38  ;;  %2272 = vmatprep.subr.mxu0 %v2611_v0  ;;  %v1303_v38 = vsub.f32 %v3141_v49, %v1302_v8 }
 0x13b   :  { %2315 = vmatprep.subr.mxu1 %v2611_v0  ;;  %2273 = vmatpush3.msra.mxu0 %v3530_v6  ;;  %v1330_v42 = vand.u32 4294901760, %v3165_v12  ;;  %v1344_v46 = vand.u32 4294901760, %v3181_v50  ;;  %v1338_v54 = vsub.f32 %v3169_v13, %v1337_v62  ;;  %v1182_v6 = vld [vmem:[%s3515_s5 + $0x20] sm:$0xff] }
 0x13c   :  { %2316 = vmatpush3.msra.mxu1 %v2887_v51  ;;  %2274 = vmatprep.subr.mxu0 %v2611_v0  ;;  %v1310_v51 = vsub.f32 %v3149_v63, %v1309_v14  ;;  %v1304_v58 = vand.u32 4294901760, %v1303_v38 }
 0x13d   :  { %2317 = vmatprep.subr.mxu1 %v2611_v0  ;;  %2275 = vmatpush3.msra.mxu0 %v3531_v11  ;;  %v1331_v43 = vsub.f32 %v3165_v12, %v1330_v42  ;;  %v1345_v61 = vsub.f32 %v3181_v50, %v1344_v46  ;;  %v1339_v10 = vand.u32 4294901760, %v1338_v54  ;;  %v1352_v11 = vsub.f32 %v3225_v18, %v1351_v33 }
 0x13e   :  { %2318 = vmatpush3.msra.mxu1 %v2900_v59  ;;  %2319 = vmatprep.mubr.msk.f32.mxu1 %vm2612_vm0, %v2611_v0  ;;  %v1324_v59 = vsub.f32 %v3155_v3, %v1323_v23  ;;  %v1311_v1 = vand.u32 4294901760, %v1310_v51  ;;  %v1179_v51 = vld [vmem:[%s3515_s5 + $0x8] sm:$0xff] }
 0x13f   :  { %2276 = vmatprep.subr.mxu0 %v2611_v0  ;;  %2320 = vmatmul.mubr.f32.vlgmr.msra.gmra.mxu1 %v2933_v22  ;;  %v1332_v60 = vand.u32 4294901760, %v1331_v43  ;;  %v1346_v29 = vand.u32 4294901760, %v1345_v61  ;;  %v1353_v25 = vand.u32 4294901760, %v1352_v11  ;;  %v1178_v43 = vld [vmem:[%s3515_s5] sm:$0xff] }
 0x140   :  { %2277 = vmatpush3.msra.mxu0 %v3532_v15  ;;  %2284 = vmatprep.mubr.msk.f32.mxu0 %vm2612_vm0, %v2611_v0  ;;  %v1325_v47 = vand.u32 4294901760, %v1324_v59  ;;  %v1358_v15 = vand.u32 4294901760, %v3237_v53 }
 0x141   :  { %2278 = vmatprep.subr.mxu0 %v2611_v0  ;;  %2357 = vmatprep.subr.mxu1 %v2611_v0 }
 0x142   :  { %2279 = vmatpush3.msra.mxu0 %v3533_v16  ;;  %2389 = vmatprep.mubr.msk.f32.mxu1 %vm2612_vm0, %v2611_v0  ;;  %v3252_v16 = vsub.f32 %v1183_v28, %v3239_v34  ;;  %v1359_v27 = vsub.f32 %v3237_v53, %v1358_v15 }
 0x143   :  { %2280 = vmatprep.subr.mxu0 %v2611_v0  ;;  %2358 = vmatpush3.msra.mxu1 %v1297_v24  ;;  %v3281_v24 = vand.u32 4294901760, %v1180_v41 }
 0x144   :  { %2281 = vmatpush3.msra.mxu0 %v3534_v20  ;;  %2359 = vmatprep.subr.mxu1 %v2611_v0  ;;  %v3254_v20 = vand.u32 4294901760, %v1182_v6  ;;  %v3529_v32 = vand.u32 4294901760, %v3252_v16  ;;  %v1360_v44 = vand.u32 4294901760, %v1359_v27 }
 0x145   :  { %2282 = vmatprep.subr.mxu0 %v2611_v0  ;;  %2360 = vmatpush3.msra.mxu1 %v1304_v58  ;;  %v3295_v59 = vsub.f32 %v1180_v41, %v3281_v24 }
 0x146   :  { %2283 = vmatpush3.msra.mxu0 %v3535_v21  ;;  %2361 = vmatprep.subr.mxu1 %v2611_v0  ;;  %v1181_v21 = vld [vmem:[%s3515_s5 + $0x18] sm:$0xff]  ;;  %v3267_v35 = vsub.f32 %v1182_v6, %v3254_v20  ;;  %v1366_v45 = vsub.f32 %v3252_v16, %v3529_v32 }
 0x147   :  { %2285 = vmatmul.mubr.f32.vlgmr.msra.gmra.mxu0 %v2933_v22  ;;  %2322 = vmatprep.subr.mxu0 %v2611_v0  ;;  %v1316_v22 = vand.u32 4294901760, %v3152_v2  ;;  %v3271_v36 = vand.u32 4294901760, %v1181_v21  ;;  %v3526_v54 = vand.u32 4294901760, %v3295_v59 }
 0x148   :  { %2354 = vmatprep.mubr.msk.f32.mxu0 %vm2612_vm0, %v2611_v0  ;;  %2323 = vmatpush3.msra.mxu0 %v3103_v26  ;;  %v3528_v7 = vand.u32 4294901760, %v3267_v35 }
 0x149   :  { %2324 = vmatprep.subr.mxu0 %v2611_v0  ;;  %v1317_v57 = vsub.f32 %v3152_v2, %v1316_v22  ;;  %2362 = vmatpush3.msra.mxu1 %v1311_v1  ;;  %v3285_v38 = vsub.f32 %v1181_v21, %v3271_v36  ;;  %v3297_v1 = vand.u32 4294901760, %v1179_v51  ;;  %v1387_v9 = vsub.f32 %v3295_v59, %v3526_v54 }
 0x14a   :  { %2325 = vmatpush3.msra.mxu0 %v3111_v31  ;;  %2363 = vmatprep.subr.mxu1 %v2611_v0  ;;  %v1373_v58 = vsub.f32 %v3267_v35, %v3528_v7 }
 0x14b   :  { %2326 = vmatprep.subr.mxu0 %v2611_v0  ;;  %v1318_v17 = vand.u32 4294901760, %v1317_v57  ;;  %v1367_v57 = vand.u32 4294901760, %v1366_v45  ;;  %v3308_v56 = vsub.f32 %v1179_v51, %v3297_v1  ;;  %v1388_v6 = vand.u32 4294901760, %v1387_v9  ;;  %v1864_v9 = vld [vmem:[#allocation5] ss:$0 sm:$0xff] }
 0x14c   :  { %2327 = vmatpush3.msra.mxu0 %v3123_v37 }
 0x14d   :  { %2328 = vmatprep.subr.mxu0 %v2611_v0  ;;  %2364 = vmatpush3.msra.mxu1 %v1318_v17  ;;  %v3527_v17 = vand.u32 4294901760, %v3285_v38 }
 0x14e   :  { %2329 = vmatpush3.msra.mxu0 %v3125_v39  ;;  %2365 = vmatprep.subr.mxu1 %v2611_v0 }
 0x14f   :  { %2330 = vmatprep.subr.mxu0 %v2611_v0  ;;  %2366 = vmatpush3.msra.mxu1 %v1325_v47  ;;  %v1374_v47 = vand.u32 4294901760, %v1373_v58  ;;  %v1380_v61 = vsub.f32 %v3285_v38, %v3527_v17 }
 0x150   :  { %2331 = vmatpush3.msra.mxu0 %v3127_v40  ;;  %2367 = vmatprep.subr.mxu1 %v2611_v0 }
 0x151   :  { %2332 = vmatprep.subr.mxu0 %v2611_v0  ;;  %2368 = vmatpush3.msra.mxu1 %v1332_v60  ;;  %v3310_v60 = vand.u32 4294901760, %v1178_v43 }
 0x152   :  { %2333 = vmatpush3.msra.mxu0 %v3144_v52  ;;  %2369 = vmatprep.subr.mxu1 %v2611_v0 }
 0x153   :  { %2334 = vmatprep.subr.mxu0 %v2611_v0  ;;  %2370 = vmatpush3.msra.mxu1 %v1339_v10  ;;  %v3525_v10 = vand.u32 4294901760, %v3308_v56  ;;  %v3323_v28 = vsub.f32 %v1178_v43, %v3310_v60 }
 0x154   :  { %2335 = vmatpush3.msra.mxu0 %v3146_v55  ;;  %2371 = vmatprep.subr.mxu1 %v2611_v0 }
 0x155   :  { %2336 = vmatprep.subr.mxu0 %v2611_v0  ;;  %2372 = vmatpush3.msra.mxu1 %v1346_v29  ;;  %v1381_v29 = vand.u32 4294901760, %v1380_v61  ;;  %v1394_v11 = vsub.f32 %v3308_v56, %v3525_v10  ;;  %v3524_v21 = vand.u32 4294901760, %v3323_v28 }
 0x156   :  { %2337 = vmatpush3.msra.mxu0 %v3158_v5  ;;  %2373 = vmatprep.subr.mxu1 %v2611_v0 }
 0x157   :  { %2338 = vmatprep.subr.mxu0 %v2611_v0  ;;  %2374 = vmatpush3.msra.mxu1 %v1353_v25  ;;  %v1395_v25 = vand.u32 4294901760, %v1394_v11  ;;  %v1401_v27 = vsub.f32 %v3323_v28, %v3524_v21 }
 0x158   :  { %2339 = vmatpush3.msra.mxu0 %v3216_v4  ;;  %2375 = vmatprep.subr.mxu1 %v2611_v0 }
 0x159   :  { %2340 = vmatprep.subr.mxu0 %v2611_v0  ;;  %2376 = vmatpush3.msra.mxu1 %v1360_v44  ;;  %v1402_v41 = vand.u32 4294901760, %v1401_v27 }
 0x15a   :  { %2341 = vmatpush3.msra.mxu0 %v3227_v19  ;;  %2377 = vmatprep.subr.mxu1 %v2611_v0 }
 0x15b   :  { %2342 = vmatprep.subr.mxu0 %v2611_v0  ;;  %2378 = vmatpush3.msra.mxu1 %v1367_v57 }
 0x15c   :  { %2343 = vmatpush3.msra.mxu0 %v3239_v34  ;;  %2379 = vmatprep.subr.mxu1 %v2611_v0 }
 0x15d   :  { %2344 = vmatprep.subr.mxu0 %v2611_v0  ;;  %2380 = vmatpush3.msra.mxu1 %v1374_v47 }
 0x15e   :  { %2345 = vmatpush3.msra.mxu0 %v3254_v20  ;;  %2381 = vmatprep.subr.mxu1 %v2611_v0 }
 0x15f   :  { %2346 = vmatprep.subr.mxu0 %v2611_v0  ;;  %2382 = vmatpush3.msra.mxu1 %v1381_v29 }
 0x160   :  { %2347 = vmatpush3.msra.mxu0 %v3271_v36  ;;  %2383 = vmatprep.subr.mxu1 %v2611_v0 }
 0x161   :  { %2348 = vmatprep.subr.mxu0 %v2611_v0  ;;  %2384 = vmatpush3.msra.mxu1 %v1388_v6 }
 0x162   :  { %2349 = vmatpush3.msra.mxu0 %v3281_v24  ;;  %2385 = vmatprep.subr.mxu1 %v2611_v0 }
 0x163   :  { %2350 = vmatprep.subr.mxu0 %v2611_v0  ;;  %2386 = vmatpush3.msra.mxu1 %v1395_v25 }
 0x164   :  { %2351 = vmatpush3.msra.mxu0 %v3297_v1  ;;  %2387 = vmatprep.subr.mxu1 %v2611_v0 }
 0x165   :  { %2352 = vmatprep.subr.mxu0 %v2611_v0  ;;  %2388 = vmatpush3.msra.mxu1 %v1402_v41 }
 0x166   :  { %2353 = vmatpush3.msra.mxu0 %v3310_v60  ;;  %2427 = vmatprep.subr.mxu1 %v2611_v0 }
 0x167   :  { %2392 = vmatprep.subr.mxu0 %v2611_v0 }
 0x1bd   :  { %v774_v44 = vpop.f32.mrf.mxu1 }
 0x1bf   :  { %v2181_v45 = vpop.f32.mrf.mxu1 }
 0x1c5   :  { %v623_v51 = vpop.f32.mrf.mxu0 }
 0x1c6   :  { %v624_v29 = vadd.f32 %v1864_v9, %v623_v51 }
 0x1c7   :  { %v2146_v57 = vpop.f32.mrf.mxu0 }
 0x1c8   :  { %v775_v11 = vadd.f32 %v774_v44, %v624_v29 }
 0x1dd   :  { %v967_v58 = vpop.f32.mrf.mxu1 }
 0x1df   :  { %v2251_v43 = vpop.f32.mrf.mxu1 }
 0x1e6   :  { %v878_v47 = vpop.f32.mrf.mxu0 }
 0x1e7   :  { %v879_v27 = vadd.f32 %v878_v47, %v775_v11 }
 0x1e8   :  { %v2216_v61 = vpop.f32.mrf.mxu0 }
 0x1e9   :  { %v968_v25 = vadd.f32 %v967_v58, %v879_v27 }
 0x1ff   :  { %v1173_v6 = vpop.f32.mrf.mxu1 }
 0x201   :  { %v2321_v21 = vpop.f32.mrf.mxu1 }
 0x207   :  { %v1086_v10 = vpop.f32.mrf.mxu0 }
 0x208   :  { %v1087_v54 = vadd.f32 %v1086_v10, %v968_v25 }
 0x209   :  { %v2286_v41 = vpop.f32.mrf.mxu0 }
 0x20a   :  { %v1174_v17 = vadd.f32 %v1173_v6, %v1087_v54 }
 0x20c   :  { %v1177_v7 = vmax.f32 %v1174_v17, 0.0 }
 0x20e   :  { %v3340_v32 = vand.u32 4294901760, %v1177_v7 }
 0x210   :  { %v3343_v45 = vsub.f32 %v1177_v7, %v3340_v32  ;;  %2390 = vmatmul.mubr.f32.vlgmr.msra.gmra.mxu1 %v3340_v32 }
 0x211   :  { %2428 = vmatpush3.msra.mxu1 %v3103_v26  ;;  %2459 = vmatprep.mubr.msk.f32.mxu1 %vm2612_vm0, %v2611_v0 }
 0x212   :  { %v1284_v21 = vand.u32 4294901760, %v3343_v45  ;;  %2429 = vmatprep.subr.mxu1 %v2611_v0 }
 0x213   :  { %2430 = vmatpush3.msra.mxu1 %v3111_v31 }
 0x214   :  { %2431 = vmatprep.subr.mxu1 %v2611_v0  ;;  %v1285_v17 = vsub.f32 %v3343_v45, %v1284_v21 }
 0x215   :  { %2432 = vmatpush3.msra.mxu1 %v3123_v37 }
 0x216   :  { %2433 = vmatprep.subr.mxu1 %v2611_v0  ;;  %v1286_v7 = vand.u32 4294901760, %v1285_v17 }
 0x217   :  { %2434 = vmatpush3.msra.mxu1 %v3125_v39 }
 0x218   :  { %2435 = vmatprep.subr.mxu1 %v2611_v0  ;;  %2355 = vmatmul.mubr.f32.vlgmr.msra.gmra.mxu0 %v1286_v7 }
 0x219   :  { %2393 = vmatpush3.msra.mxu0 %v3109_v30  ;;  %2436 = vmatpush3.msra.mxu1 %v3127_v40  ;;  %v3537_v30 = vand.u32 4294901760, %v3267_v35 }
 0x21a   :  { %2394 = vmatprep.subr.mxu0 %v2611_v0  ;;  %2437 = vmatprep.subr.mxu1 %v2611_v0 }
 0x21b   :  { %2395 = vmatpush3.msra.mxu0 %v3141_v49  ;;  %2438 = vmatpush3.msra.mxu1 %v3144_v52 }
 0x21c   :  { %2396 = vmatprep.subr.mxu0 %v2611_v0  ;;  %2439 = vmatprep.subr.mxu1 %v2611_v0 }
 0x21d   :  { %2397 = vmatpush3.msra.mxu0 %v3149_v63  ;;  %2440 = vmatpush3.msra.mxu1 %v3146_v55 }
 0x21e   :  { %2398 = vmatprep.subr.mxu0 %v2611_v0  ;;  %2441 = vmatprep.subr.mxu1 %v2611_v0 }
 0x21f   :  { %2399 = vmatpush3.msra.mxu0 %v3152_v2  ;;  %2442 = vmatpush3.msra.mxu1 %v3158_v5 }
 0x220   :  { %2400 = vmatprep.subr.mxu0 %v2611_v0  ;;  %2443 = vmatprep.subr.mxu1 %v2611_v0 }
 0x221   :  { %2401 = vmatpush3.msra.mxu0 %v3155_v3  ;;  %2444 = vmatpush3.msra.mxu1 %v3216_v4 }
 0x222   :  { %2402 = vmatprep.subr.mxu0 %v2611_v0  ;;  %2445 = vmatprep.subr.mxu1 %v2611_v0 }
 0x223   :  { %2403 = vmatpush3.msra.mxu0 %v3165_v12  ;;  %2446 = vmatpush3.msra.mxu1 %v3227_v19 }
 0x224   :  { %2404 = vmatprep.subr.mxu0 %v2611_v0  ;;  %2447 = vmatprep.subr.mxu1 %v2611_v0 }
 0x225   :  { %2405 = vmatpush3.msra.mxu0 %v3169_v13  ;;  %2448 = vmatpush3.msra.mxu1 %v3239_v34 }
 0x226   :  { %2406 = vmatprep.subr.mxu0 %v2611_v0  ;;  %2449 = vmatprep.subr.mxu1 %v2611_v0 }
 0x227   :  { %2407 = vmatpush3.msra.mxu0 %v3181_v50  ;;  %2450 = vmatpush3.msra.mxu1 %v3254_v20 }
 0x228   :  { %2408 = vmatprep.subr.mxu0 %v2611_v0  ;;  %2451 = vmatprep.subr.mxu1 %v2611_v0 }
 0x229   :  { %2409 = vmatpush3.msra.mxu0 %v3225_v18  ;;  %2452 = vmatpush3.msra.mxu1 %v3271_v36 }
 0x22a   :  { %2410 = vmatprep.subr.mxu0 %v2611_v0  ;;  %2453 = vmatprep.subr.mxu1 %v2611_v0 }
 0x22b   :  { %2411 = vmatpush3.msra.mxu0 %v3237_v53  ;;  %2454 = vmatpush3.msra.mxu1 %v3281_v24 }
 0x22c   :  { %2412 = vmatprep.subr.mxu0 %v2611_v0  ;;  %2455 = vmatprep.subr.mxu1 %v2611_v0 }
 0x22d   :  { %2413 = vmatpush3.msra.mxu0 %v3252_v16  ;;  %2456 = vmatpush3.msra.mxu1 %v3297_v1 }
 0x22e   :  { %2414 = vmatprep.subr.mxu0 %v2611_v0  ;;  %2457 = vmatprep.subr.mxu1 %v2611_v0 }
 0x22f   :  { %2415 = vmatpush3.msra.mxu0 %v3267_v35  ;;  %2458 = vmatpush3.msra.mxu1 %v3310_v60 }
 0x230   :  { %2416 = vmatprep.subr.mxu0 %v2611_v0  ;;  %2460 = vmatmul.mubr.f32.vlgmr.msra.gmra.mxu1 %v1284_v21 }
 0x231   :  { %2497 = vmatprep.subr.mxu1 %v2611_v0  ;;  %2417 = vmatpush3.msra.mxu0 %v3285_v38 }
 0x232   :  { %2498 = vmatpush3.msra.mxu1 %v3103_v26  ;;  %2418 = vmatprep.subr.mxu0 %v2611_v0  ;;  %v3536_v26 = vand.u32 4294901760, %v3252_v16 }
 0x233   :  { %2499 = vmatprep.subr.mxu1 %v2611_v0  ;;  %2419 = vmatpush3.msra.mxu0 %v3295_v59 }
 0x234   :  { %2500 = vmatpush3.msra.mxu1 %v3111_v31  ;;  %2420 = vmatprep.subr.mxu0 %v2611_v0  ;;  %v3538_v31 = vand.u32 4294901760, %v3285_v38 }
 0x235   :  { %2501 = vmatprep.subr.mxu1 %v2611_v0  ;;  %2421 = vmatpush3.msra.mxu0 %v3308_v56 }
 0x236   :  { %2502 = vmatpush3.msra.mxu1 %v3123_v37  ;;  %2422 = vmatprep.subr.mxu0 %v2611_v0  ;;  %v3539_v37 = vand.u32 4294901760, %v3295_v59 }
 0x237   :  { %2503 = vmatprep.subr.mxu1 %v2611_v0  ;;  %2423 = vmatpush3.msra.mxu0 %v3323_v28 }
 0x238   :  { %2424 = vmatprep.mubr.msk.f32.mxu0 %vm2612_vm0, %v2611_v0  ;;  %2504 = vmatpush3.msra.mxu1 %v3125_v39  ;;  %v3540_v39 = vand.u32 4294901760, %v3308_v56 }
 0x239   :  { %2425 = vmatmul.mubr.f32.vlgmr.msra.gmra.mxu0 %v3343_v45  ;;  %2462 = vmatprep.subr.mxu0 %v2611_v0 }
 0x23a   :  { %2505 = vmatprep.subr.mxu1 %v2611_v0  ;;  %2463 = vmatpush3.msra.mxu0 %v1295_v48 }
 0x23b   :  { %2506 = vmatpush3.msra.mxu1 %v3127_v40  ;;  %2464 = vmatprep.subr.mxu0 %v2611_v0  ;;  %v3541_v40 = vand.u32 4294901760, %v3323_v28 }
 0x23c   :  { %2507 = vmatprep.subr.mxu1 %v2611_v0  ;;  %2465 = vmatpush3.msra.mxu0 %v1302_v8  ;;  %v1865_v8 = vld [vmem:[%s3516_s6] ss:$0 sm:$0xff] }
 0x23d   :  { %2508 = vmatpush3.msra.mxu1 %v3144_v52  ;;  %2466 = vmatprep.subr.mxu0 %v2611_v0 }
 0x23e   :  { %2509 = vmatprep.subr.mxu1 %v2611_v0  ;;  %2467 = vmatpush3.msra.mxu0 %v1309_v14 }
 0x23f   :  { %2510 = vmatpush3.msra.mxu1 %v3146_v55  ;;  %2468 = vmatprep.subr.mxu0 %v2611_v0 }
 0x240   :  { %2511 = vmatprep.subr.mxu1 %v2611_v0  ;;  %2469 = vmatpush3.msra.mxu0 %v1316_v22 }
 0x241   :  { %2512 = vmatpush3.msra.mxu1 %v3158_v5  ;;  %2470 = vmatprep.subr.mxu0 %v2611_v0 }
 0x242   :  { %2513 = vmatprep.subr.mxu1 %v2611_v0  ;;  %2471 = vmatpush3.msra.mxu0 %v1323_v23 }
 0x243   :  { %2514 = vmatpush3.msra.mxu1 %v3216_v4  ;;  %2472 = vmatprep.subr.mxu0 %v2611_v0 }
 0x244   :  { %2515 = vmatprep.subr.mxu1 %v2611_v0  ;;  %2473 = vmatpush3.msra.mxu0 %v1330_v42 }
 0x245   :  { %2516 = vmatpush3.msra.mxu1 %v3227_v19  ;;  %2474 = vmatprep.subr.mxu0 %v2611_v0 }
 0x246   :  { %2517 = vmatprep.subr.mxu1 %v2611_v0  ;;  %2475 = vmatpush3.msra.mxu0 %v1337_v62 }
 0x247   :  { %2518 = vmatpush3.msra.mxu1 %v3239_v34  ;;  %2476 = vmatprep.subr.mxu0 %v2611_v0 }
 0x248   :  { %2519 = vmatprep.subr.mxu1 %v2611_v0  ;;  %2477 = vmatpush3.msra.mxu0 %v1344_v46 }
 0x249   :  { %2520 = vmatpush3.msra.mxu1 %v3254_v20  ;;  %2478 = vmatprep.subr.mxu0 %v2611_v0 }
 0x24a   :  { %2521 = vmatprep.subr.mxu1 %v2611_v0  ;;  %2479 = vmatpush3.msra.mxu0 %v1351_v33 }
 0x24b   :  { %2522 = vmatpush3.msra.mxu1 %v3271_v36  ;;  %2480 = vmatprep.subr.mxu0 %v2611_v0 }
 0x24c   :  { %2523 = vmatprep.subr.mxu1 %v2611_v0  ;;  %2481 = vmatpush3.msra.mxu0 %v1358_v15 }
 0x24d   :  { %2524 = vmatpush3.msra.mxu1 %v3281_v24  ;;  %2482 = vmatprep.subr.mxu0 %v2611_v0 }
 0x24e   :  { %2525 = vmatprep.subr.mxu1 %v2611_v0  ;;  %2483 = vmatpush3.msra.mxu0 %v3536_v26 }
 0x24f   :  { %2526 = vmatpush3.msra.mxu1 %v3297_v1  ;;  %2484 = vmatprep.subr.mxu0 %v2611_v0 }
 0x250   :  { %2527 = vmatprep.subr.mxu1 %v2611_v0  ;;  %2485 = vmatpush3.msra.mxu0 %v3537_v30 }
 0x251   :  { %2528 = vmatpush3.msra.mxu1 %v3310_v60  ;;  %2529 = vmatprep.mubr.msk.f32.mxu1 %vm2612_vm0, %v2611_v0 }
 0x252   :  { %2486 = vmatprep.subr.mxu0 %v2611_v0  ;;  %2530 = vmatmul.mubr.f32.vlgmr.msra.gmra.mxu1 %v3340_v32 }
 0x253   :  { %2487 = vmatpush3.msra.mxu0 %v3538_v31  ;;  %2494 = vmatprep.mubr.msk.f32.mxu0 %vm2612_vm0, %v2611_v0 }
 0x254   :  { %2488 = vmatprep.subr.mxu0 %v2611_v0 }
 0x255   :  { %2489 = vmatpush3.msra.mxu0 %v3539_v37 }
 0x256   :  { %2490 = vmatprep.subr.mxu0 %v2611_v0 }
 0x257   :  { %2491 = vmatpush3.msra.mxu0 %v3540_v39 }
 0x258   :  { %2492 = vmatprep.subr.mxu0 %v2611_v0 }
 0x259   :  { %2493 = vmatpush3.msra.mxu0 %v3541_v40 }
 0x25a   :  { %2495 = vmatmul.mubr.f32.vlgmr.msra.gmra.mxu0 %v3340_v32 }
 0x2d0   :  { %v1439_v48 = vpop.f32.mrf.mxu1 }
 0x2d2   :  { %v2391_v49 = vpop.f32.mrf.mxu1 }
 0x2d8   :  { %v1288_v52 = vpop.f32.mrf.mxu0 }
 0x2d9   :  { %v1289_v12 = vadd.f32 %v1865_v8, %v1288_v52 }
 0x2da   :  { %v2356_v55 = vpop.f32.mrf.mxu0 }
 0x2db   :  { %v1440_v0 = vadd.f32 %v1439_v48, %v1289_v12 }
 0x2f0   :  { %v1632_v63 = vpop.f32.mrf.mxu1 }
 0x2f2   :  { %v2461_v2 = vpop.f32.mrf.mxu1 }
 0x2f9   :  { %v1543_v3 = vpop.f32.mrf.mxu0 }
 0x2fa   :  { %v1544_v22 = vadd.f32 %v1543_v3, %v1440_v0 }
 0x2fb   :  { %v2426_v5 = vpop.f32.mrf.mxu0 }
 0x2fc   :  { %v1633_v23 = vadd.f32 %v1632_v63, %v1544_v22 }
 0x312   :  { %v1838_v13 = vpop.f32.mrf.mxu1 }
 0x314   :  { %v2531_v14 = vpop.f32.mrf.mxu1 }
 0x31a   :  { %v1751_v42 = vpop.f32.mrf.mxu0 }
 0x31b   :  { %v1752_v50 = vadd.f32 %v1751_v42, %v1633_v23 }
 0x31c   :  { %v2496_v62 = vpop.f32.mrf.mxu0 }
 0x31d   :  { %v1839_v46 = vadd.f32 %v1838_v13, %v1752_v50 }
 0x31f   :  { %2539 = vtanh.f32 %v1839_v46 }
 0x32c   :  { %v2540_v4 = vpop.eup %2539 }
 0x32d   :  { %1844 = vst.msk [vmem:[#allocation7] sm:$0xff] %vm1843_vm2, %v2540_v4 }
 0x32e   :  { %1849 = vsyncadd [#allocation4], 96  ;;  %s2613_s8 = smov [#allocation7]  }
 0x32f   :  { %s1850_s9 = sshll.u32 %s2613_s8, 4  ;;  %s1851_s9 = int_to_ptr.vmem [resolvable:$true] %s1850_s9 }
 0x330   :  { %s2581_s10 = scalar_lea.vmem %s1851_s9, 32  ;;  %s2585_s6 = scalar_lea.vmem %s1851_s9, 128 }
 0x331   :  { %p2582_p10 = scmp.ne.s32.totalorder %s1851_s9, %s2581_s10  ;;  %p2586_p11 = scmp.lt.s32.totalorder %s1851_s9, %s1851_s9 }
 0x332   :  { %p2587_p12 = scmp.lt.s32.totalorder %s2585_s6, %s2581_s10 }
 0x334   :  { %p2588_p13 = por %p2587_p12, %p2586_p11 }
 0x336   :  { %p2589_p0 = pnand %p2588_p13, %p2582_p10 }
 0x338   :  { %2592 = shalt.err (!%p2589_p0)
}
 0x339   :  { %1856 = dma.vmem_to_hbm [thread:$0]  %s1851_s9, 32, %s3517_s7, [#allocation4], %s2608_s28, %s2608_s28, %s2609_s29  }
 0x33a   :  { %2605 = dma.done.wait [#allocation4], 128  }
 0x33b   :  { %2606 = vsyncadd [#allocation4], 4294967168 }
 0x33c   :  { %1860 = vsyncpa [#allocation3], 1 }
 0x33d   :  { %1861 = vsyncpa [#allocation6], 1 }
 0x33e   :  { %1862 = vsyncpa [#allocation4], 1 }

</bundles_post_ra>
